<compile_context>
chip_gen: v5e
topology: v5e:2x2
jax: 0.10.0
libtpu: 0.0.40
codegen_flags: <defaults>
</compile_context>

<pallas_src>
import math

import jax
import jax.numpy as jnp
from jax.experimental import pallas as pl
from jax.experimental.pallas import tpu as pltpu

STATES = 3
HIDDEN = 128
ACTIONS = 1
_LANES = 128

_SELU_ALPHA = 1.6732632423543772848170429916717
_SELU_SCALE = 1.0507009873554804934193349852946
_HALF_LOG_2PI = 0.5 * math.log(2.0 * math.pi)


def _sac_policy_kernel(xTa_ref, w1b_ref, wh_ref, bh_ref, epsT_ref, out_ref):
    """Lane-dense SAC policy forward for one batch tile.

    xTa_ref : [STATES+1, TB]       states^T with an appended ones row (folds b1), batch on lanes
    w1b_ref : [HIDDEN, STATES+1]   [W1 | b1]  (fc1 weight + bias fused)
    wh_ref  : [2*ACTIONS, HIDDEN]  fused fc_mu | fc_std weight
    bh_ref  : [2*ACTIONS, 1]       fused fc_mu | fc_std bias (column)
    epsT_ref: [ACTIONS, TB]        standard-normal noise, batch on lanes
    out_ref : [2*ACTIONS, TB]      rows [0:A) = action^T, rows [A:2A) = log_prob^T
    """
    # fc1 (+ bias via the ones row of xTa) + SELU  ->  h^T [HIDDEN, TB]
    h = jnp.dot(w1b_ref[...], xTa_ref[...], preferred_element_type=jnp.float32)
    h = _SELU_SCALE * jnp.where(h > 0.0, h, _SELU_ALPHA * (jnp.exp(h) - 1.0))

    # Fused heads: one K=HIDDEN MXU contraction producing [mu ; std_preact].
    heads = jnp.dot(wh_ref[...], h, preferred_element_type=jnp.float32) + bh_ref[...]
    mu = heads[:ACTIONS, :]
    # softplus (numerically stable): log(1 + exp(z)) = logaddexp(0, z)
    std = jnp.logaddexp(jnp.float32(0.0), heads[ACTIONS:, :])

    # rsample + log_prob.  Since action - mu == std * eps exactly, the quadratic term reduces
    # to -0.5*eps^2 (also avoids 0/0 if std underflows).
    eps = epsT_ref[...]
    action = mu + std * eps
    log_prob = -0.5 * (eps * eps) - jnp.log(std) - _HALF_LOG_2PI

    # Single unmasked full-block lane-dense store.
    out_ref[...] = jnp.concatenate([action, log_prob], axis=0)


def _round_up(n, m):
    return ((n + m - 1) // m) * m


def _tensorcores_per_chip():
    """Best-effort TensorCore count per device (megacore chips and v7x expose 2)."""
    try:
        kind = jax.devices()[0].device_kind.lower()
    except Exception:
        return 1
    return 2 if any(tag in kind for tag in ("v4", "v5p", "v7")) else 1


def _choose_tiling(B, max_tile):
    """Pick (tb, grid_b, Bp): lane dim always a multiple of 128; >=2 steps only on 2-TC chips."""
    Bp = _round_up(B, _LANES)
    cores = _tensorcores_per_chip()
    if cores >= 2 and Bp >= 2 * _LANES:
        # Split across TensorCores (but never more steps than needed).
        tb = min(_round_up(-(-Bp // cores), _LANES), max_tile)
    else:
        # Single-TC chips: one block covering the whole padded batch whenever it fits.
        tb = min(Bp, max_tile)
    grid_b = -(-Bp // tb)
    return tb, grid_b, grid_b * tb


def _pack_params(params):
    """Fuse fc1 bias into its weight and fc_mu/fc_std into one head weight/bias."""
    w1b = jnp.concatenate(
        [params["w1"], params["b1"].reshape(HIDDEN, 1)], axis=1
    ).astype(jnp.float32)                                                     # [HIDDEN, STATES+1]
    wh = jnp.concatenate([params["wmu"], params["wstd"]], axis=0).astype(jnp.float32)  # [2A, HIDDEN]
    bh = jnp.concatenate([params["bmu"], params["bstd"]], axis=0).reshape(
        2 * ACTIONS, 1
    ).astype(jnp.float32)                                                     # [2A, 1]
    return w1b, wh, bh


def sac_policy_forward(x, params, eps_t, *, max_tile=4096):
    """SACPolicyNet.forward.

    x     : [B, STATES] f32 states.
    eps_t : [ACTIONS, B] f32 standard-normal noise, already lane-dense (it is i.i.d. noise,
            so the caller is free to generate it directly in this layout).
    Returns (action, log_prob), each [B, ACTIONS].
    """
    B = x.shape[0]
    w1b, wh, bh = _pack_params(params)
    tb, grid_b, Bp = _choose_tiling(B, max_tile)

    # One pad does double duty: rounds the batch (lane) dim up to a multiple of 128 AND appends
    # the ones row that folds the fc1 bias into the first matmul.  Padded batch columns produce
    # finite garbage that is sliced off below.
    xTa = jnp.pad(
        jnp.transpose(x).astype(jnp.float32), ((0, 1), (0, Bp - B)), constant_values=1.0
    )                                                                          # [STATES+1, Bp]
    epsT = eps_t.astype(jnp.float32)
    if Bp != B:
        epsT = jnp.pad(epsT, ((0, 0), (0, Bp - B)))                            # [ACTIONS, Bp]

    out = pl.pallas_call(
        _sac_policy_kernel,
        out_shape=jax.ShapeDtypeStruct((2 * ACTIONS, Bp), jnp.float32),
        grid=(grid_b,),
        in_specs=[
            pl.BlockSpec((STATES + 1, tb), lambda i: (0, i)),           # x^T|1 tile (pipelined)
            pl.BlockSpec((HIDDEN, STATES + 1), lambda i: (0, 0)),       # [W1|b1]  (VMEM-resident)
            pl.BlockSpec((2 * ACTIONS, HIDDEN), lambda i: (0, 0)),      # fused head W
            pl.BlockSpec((2 * ACTIONS, 1), lambda i: (0, 0)),           # fused head b
            pl.BlockSpec((ACTIONS, tb), lambda i: (0, i)),              # eps^T tile (pipelined)
        ],
        out_specs=pl.BlockSpec((2 * ACTIONS, tb), lambda i: (0, i)),
        compiler_params=pltpu.CompilerParams(
            # Batch tiles shard across TensorCores on 2-TC chips; harmless elsewhere.
            dimension_semantics=("parallel",),
            # No vmem_limit_bytes: working set is ~2 KiB per lane column (h^T dominates),
            # i.e. <10 MiB even at tb=4096 -- well under every chip's default scoped VMEM.
        ),
    )(xTa, w1b, wh, bh, epsT)

    slab = out[:, :B] if Bp != B else out
    action = jnp.transpose(slab[:ACTIONS, :])      # [B, ACTIONS]
    log_prob = jnp.transpose(slab[ACTIONS:, :])    # [B, ACTIONS]
    return action, log_prob


def init_params(key):
    """Deterministic init mimicking PyTorch nn.Linear (uniform +/- 1/sqrt(fan_in)).
    Weights stored in PyTorch layout [out, in]; biases as [out]."""
    k1, k2, k3, k4, k5, k6 = jax.random.split(key, 6)

    def lin(kw, kb, fan_in, fan_out):
        bound = 1.0 / math.sqrt(fan_in)
        w = jax.random.uniform(kw, (fan_out, fan_in), jnp.float32, -bound, bound)
        b = jax.random.uniform(kb, (fan_out,), jnp.float32, -bound, bound)
        return w, b

    w1, b1 = lin(k1, k2, STATES, HIDDEN)
    wmu, bmu = lin(k3, k4, HIDDEN, ACTIONS)
    wstd, bstd = lin(k5, k6, HIDDEN, ACTIONS)
    return dict(w1=w1, b1=b1, wmu=wmu, bmu=bmu, wstd=wstd, bstd=bstd)


def _reference_forward(x, params, eps):
    """Pure-JAX reference matching the PyTorch forward (eps: [B, ACTIONS])."""
    h = jax.nn.selu(x @ params["w1"].T + params["b1"])
    mu = h @ params["wmu"].T + params["bmu"]
    std = jax.nn.softplus(h @ params["wstd"].T + params["bstd"])
    action = mu + std * eps
    log_prob = -((action - mu) ** 2) / (2.0 * std * std) - jnp.log(std) - _HALF_LOG_2PI
    return action, log_prob


if __name__ == "__main__":
    key = jax.random.PRNGKey(0)
    kx, kp, keps, kx2, keps2 = jax.random.split(key, 5)

    params = init_params(kp)

    # Small-batch check (B=8 -> padded to one 128-lane tile, grid=1).
    B = 8
    x = jax.random.normal(kx, (B, STATES), dtype=jnp.float32)
    eps_t = jax.random.normal(keps, (ACTIONS, B), dtype=jnp.float32)   # lane-dense noise
    action, log_prob = sac_policy_forward(x, params, eps_t)
    jax.block_until_ready((action, log_prob))

    ref_a, ref_lp = _reference_forward(x, params, jnp.transpose(eps_t))
    assert action.shape == (B, ACTIONS) and log_prob.shape == (B, ACTIONS)
    assert jnp.allclose(action, ref_a, atol=1e-4, rtol=1e-4), "action mismatch"
    assert jnp.allclose(log_prob, ref_lp, atol=1e-4, rtol=1e-4), "log_prob mismatch"

    # Multi-tile check: force tb=128 so the grid / index_map / padding paths are exercised.
    B2 = 300
    x2 = jax.random.normal(kx2, (B2, STATES), dtype=jnp.float32)
    eps2_t = jax.random.normal(keps2, (ACTIONS, B2), dtype=jnp.float32)
    a2, lp2 = sac_policy_forward(x2, params, eps2_t, max_tile=128)
    jax.block_until_ready((a2, lp2))

    r_a2, r_lp2 = _reference_forward(x2, params, jnp.transpose(eps2_t))
    assert jnp.allclose(a2, r_a2, atol=1e-4, rtol=1e-4), "action mismatch (tiled)"
    assert jnp.allclose(lp2, r_lp2, atol=1e-4, rtol=1e-4), "log_prob mismatch (tiled)"

    print("KERNEL_OK")
</pallas_src>

<mosaic_0001>
module attributes {stable_mosaic.version = 11 : i64} {
  func.func @_sac_policy_kernel(%arg0: i32, %arg1: memref<4x128xf32, #tpu.memory_space<vmem>>, %arg2: memref<128x4xf32, #tpu.memory_space<vmem>>, %arg3: memref<2x128xf32, #tpu.memory_space<vmem>>, %arg4: memref<2x1xf32, #tpu.memory_space<vmem>>, %arg5: memref<1x128xf32, #tpu.memory_space<vmem>>, %arg6: memref<2x128xf32, #tpu.memory_space<vmem>>) attributes {dimension_semantics = [#tpu.dimension_semantics<parallel>], iteration_bounds = array<i64: 1>, scalar_prefetch = 0 : i64, scratch_operands = 0 : i64, tpu.core_type = #tpu.core_type<tc>, window_params = [{transform_indices = @transform_0, window_bounds = array<i64: 4, 128>}, {pipeline_mode = #tpu.pipeline_mode<synchronous>, transform_indices = @transform_1, window_bounds = array<i64: 128, 4>}, {pipeline_mode = #tpu.pipeline_mode<synchronous>, transform_indices = @transform_2, window_bounds = array<i64: 2, 128>}, {pipeline_mode = #tpu.pipeline_mode<synchronous>, transform_indices = @transform_3, window_bounds = array<i64: 2, 1>}, {transform_indices = @transform_4, window_bounds = array<i64: 1, 128>}, {transform_indices = @transform_5, window_bounds = array<i64: 2, 128>}]} {
    %c0 = arith.constant 0 : index
    %c0_0 = arith.constant 0 : index
    %0 = vector.load %arg2[%c0, %c0_0] : memref<128x4xf32, #tpu.memory_space<vmem>>, vector<128x4xf32>
    %c0_1 = arith.constant 0 : index
    %c0_2 = arith.constant 0 : index
    %1 = vector.load %arg1[%c0_1, %c0_2] : memref<4x128xf32, #tpu.memory_space<vmem>>, vector<4x128xf32>
    %cst = arith.constant dense<0.000000e+00> : vector<128x128xf32>
    %2 = tpu.matmul %0, %1, %cst {dimension_numbers = #tpu.dot_dimension_numbers<[1], [0], [0], [1], [0, 0, 1, 1], [], []>} : vector<128x4xf32>, vector<4x128xf32>, vector<128x128xf32> -> vector<128x128xf32>
    %cst_3 = arith.constant 0.000000e+00 : f32
    %3 = vector.broadcast %cst_3 : f32 to vector<128x128xf32>
    %4 = arith.cmpf ogt, %2, %3 : vector<128x128xf32>
    %5 = math.exp %2 : vector<128x128xf32>
    %cst_4 = arith.constant 1.000000e+00 : f32
    %6 = vector.broadcast %cst_4 : f32 to vector<128x128xf32>
    %7 = arith.subf %5, %6 : vector<128x128xf32>
    %cst_5 = arith.constant 1.67326319 : f32
    %8 = vector.broadcast %cst_5 : f32 to vector<128x128xf32>
    %9 = arith.mulf %8, %7 : vector<128x128xf32>
    %10 = arith.select %4, %2, %9 : vector<128x128xi1>, vector<128x128xf32>
    %cst_6 = arith.constant 1.05070102 : f32
    %11 = vector.broadcast %cst_6 : f32 to vector<128x128xf32>
    %12 = arith.mulf %11, %10 : vector<128x128xf32>
    %c0_7 = arith.constant 0 : index
    %c0_8 = arith.constant 0 : index
    %13 = vector.load %arg3[%c0_7, %c0_8] : memref<2x128xf32, #tpu.memory_space<vmem>>, vector<2x128xf32>
    %cst_9 = arith.constant dense<0.000000e+00> : vector<2x128xf32>
    %14 = tpu.matmul %13, %12, %cst_9 {dimension_numbers = #tpu.dot_dimension_numbers<[1], [0], [0], [1], [0, 0, 1, 1], [], []>} : vector<2x128xf32>, vector<128x128xf32>, vector<2x128xf32> -> vector<2x128xf32>
    %c0_10 = arith.constant 0 : index
    %c0_11 = arith.constant 0 : index
    %15 = vector.load %arg4[%c0_10, %c0_11] : memref<2x1xf32, #tpu.memory_space<vmem>>, vector<2x1xf32>
    %16 = vector.broadcast %15 : vector<2x1xf32> to vector<2x128xf32>
    %17 = arith.addf %14, %16 : vector<2x128xf32>
    %18 = vector.extract_strided_slice %17 {offsets = [0, 0], sizes = [1, 128], strides = [1, 1]} : vector<2x128xf32> to vector<1x128xf32>
    %19 = vector.extract_strided_slice %17 {offsets = [1, 0], sizes = [1, 128], strides = [1, 1]} : vector<2x128xf32> to vector<1x128xf32>
    %cst_12 = arith.constant 0.000000e+00 : f32
    %20 = vector.broadcast %cst_12 : f32 to vector<1x128xf32>
    %21 = arith.maximumf %20, %19 : vector<1x128xf32>
    %22 = vector.broadcast %cst_12 : f32 to vector<1x128xf32>
    %23 = arith.subf %22, %19 : vector<1x128xf32>
    %24 = arith.cmpf one, %23, %23 : vector<1x128xf32>
    %25 = vector.broadcast %cst_12 : f32 to vector<1x128xf32>
    %26 = arith.addf %25, %19 : vector<1x128xf32>
    %27 = math.absf %23 : vector<1x128xf32>
    %cst_13 = arith.constant 0.000000e+00 : f32
    %28 = vector.broadcast %cst_13 : f32 to vector<1x128xf32>
    %29 = arith.subf %28, %27 : vector<1x128xf32>
    %30 = math.exp %29 : vector<1x128xf32>
    %31 = math.log1p %30 : vector<1x128xf32>
    %32 = arith.addf %21, %31 : vector<1x128xf32>
    %33 = arith.select %24, %26, %32 : vector<1x128xi1>, vector<1x128xf32>
    %c0_14 = arith.constant 0 : index
    %c0_15 = arith.constant 0 : index
    %34 = vector.load %arg5[%c0_14, %c0_15] : memref<1x128xf32, #tpu.memory_space<vmem>>, vector<1x128xf32>
    %35 = arith.mulf %33, %34 : vector<1x128xf32>
    %36 = arith.addf %18, %35 : vector<1x128xf32>
    %37 = arith.mulf %34, %34 : vector<1x128xf32>
    %cst_16 = arith.constant -5.000000e-01 : f32
    %38 = vector.broadcast %cst_16 : f32 to vector<1x128xf32>
    %39 = arith.mulf %38, %37 : vector<1x128xf32>
    %40 = math.log %33 : vector<1x128xf32>
    %41 = arith.subf %39, %40 : vector<1x128xf32>
    %cst_17 = arith.constant 0.918938517 : f32
    %42 = vector.broadcast %cst_17 : f32 to vector<1x128xf32>
    %43 = arith.subf %41, %42 : vector<1x128xf32>
    %44 = tpu.concatenate %36, %43 in 0 : vector<1x128xf32>, vector<1x128xf32> -> vector<2x128xf32>
    %c0_18 = arith.constant 0 : index
    %c0_19 = arith.constant 0 : index
    %45 = vector.load %arg6[%c0_18, %c0_19] : memref<2x128xf32, #tpu.memory_space<vmem>>, vector<2x128xf32>
    tpu.vector_store %arg6[%c0_18, %c0_19], %44 {strides = array<i32>} : memref<2x128xf32, #tpu.memory_space<vmem>>, vector<2x128xf32>,
    return
  }
  func.func @transform_0(%arg0: i32) -> (i32, i32) {
    %c0_i32 = arith.constant 0 : i32
    %c0_i32_0 = arith.constant 0 : i32
    return %c0_i32, %arg0 : i32, i32
  }
  func.func @transform_1(%arg0: i32) -> (i32, i32) {
    %c0_i32 = arith.constant 0 : i32
    %c0_i32_0 = arith.constant 0 : i32
    %c0_i32_1 = arith.constant 0 : i32
    return %c0_i32, %c0_i32_0 : i32, i32
  }
  func.func @transform_2(%arg0: i32) -> (i32, i32) {
    %c0_i32 = arith.constant 0 : i32
    %c0_i32_0 = arith.constant 0 : i32
    %c0_i32_1 = arith.constant 0 : i32
    return %c0_i32, %c0_i32_0 : i32, i32
  }
  func.func @transform_3(%arg0: i32) -> (i32, i32) {
    %c0_i32 = arith.constant 0 : i32
    %c0_i32_0 = arith.constant 0 : i32
    %c0_i32_1 = arith.constant 0 : i32
    return %c0_i32, %c0_i32_0 : i32, i32
  }
  func.func @transform_4(%arg0: i32) -> (i32, i32) {
    %c0_i32 = arith.constant 0 : i32
    %c0_i32_0 = arith.constant 0 : i32
    return %c0_i32, %arg0 : i32, i32
  }
  func.func @transform_5(%arg0: i32) -> (i32, i32) {
    %c0_i32 = arith.constant 0 : i32
    %c0_i32_0 = arith.constant 0 : i32
    return %c0_i32, %arg0 : i32, i32
  }
}

</mosaic_0001>

<bundles_post_ra>
// kernel: tpu_custom_call.1
= control target key start
LH: loop header
LB: loop body
LE: loop exit
PB: predicated region body
PF: predicated region fallthrough
CT: control target
= control target key end

     0   :  { %vm87_vm0 = vcmask 1043456   ;;  %vm38_vm1 = vcmask 31744   ;;  %s629_s0 = inlined_call_operand.vmem [shape: f32[4,128], index: 0, kind: input, shape index: {}]   ;;  %s630_s1 = inlined_call_operand.vmem [shape: f32[128,4], index: 1, kind: input, shape index: {}]   ;;  %s631_s2 = inlined_call_operand.vmem [shape: f32[2,128], index: 2, kind: input, shape index: {}]   ;;  %s632_s3 = inlined_call_operand.vmem [shape: f32[2,1], index: 3, kind: input, shape index: {}]   ;;  %s633_s4 = inlined_call_operand.vmem [shape: f32[1,128], index: 4, kind: input, shape index: {}]   ;;  %s634_s5 = inlined_call_operand.hbm [shape: f32[2,128], index: 5, kind: output, shape index: {}]  }
   0x1   :  { %v37_v0 = vld [vmem:[%s629_s0] sm:$0xf]  ;;  %v27_v1 = vld [vmem:[%s630_s1 + $0x30] sm:$0xff] }
   0x2   :  { %v33_v2 = vld [vmem:[%s630_s1 + $0x60] sm:$0xff]  ;;  %390 = vmatpush.msk.msra.mxu2 %vm87_vm0, %v37_v0  ;;  %391 = vmatpush.msk.msra.mxu3 %vm87_vm0, %v37_v0 }
   0x3   :  { %v21_v3 = vld [vmem:[%s630_s1] sm:$0xff]  ;;  %363 = vmatmul.msk.f32.vlgmr.msra.gmra.mxu2 %vm38_vm1, %v27_v1  ;;  %369 = vmatmul.msk.f32.vlgmr.msra.gmra.mxu3 %vm38_vm1, %v33_v2 }
   0x4   :  { %356 = vmatpush.msk.msra.mxu0 %vm87_vm0, %v37_v0 }
   0x5   :  { %357 = vmatmul.msk.f32.vlgmr.msra.gmra.mxu0 %vm38_vm1, %v21_v3 }
   0x6   :  { %10 = vsyncpa [#allocation3], 0  ;;  %v28_v4 = vld [vmem:[%s630_s1 + $0x38] sm:$0xff]  ;;  %v34_v5 = vld [vmem:[%s630_s1 + $0x68] sm:$0xff]  ;;  %s461_s30 = smov [#allocation2]   ;;  %s347_s9 = sshll.u32 %s634_s5, 4  ;;  %s348_s9 = int_to_ptr.hbm [resolvable:$true] %s347_s9 }
   0x7   :  { %v22_v6 = vld [vmem:[%s630_s1 + $0x8] sm:$0xff]  ;;  %v29_v7 = vld [vmem:[%s630_s1 + $0x40] sm:$0xff]  ;;  %v35_v8 = vld [vmem:[%s630_s1 + $0x70] sm:$0xff]  ;;  %s345_s6 = sshll.u32 %s461_s30, 4  ;;  %s346_s6 = int_to_ptr.vmem [resolvable:$true] %s345_s6 }
   0x8   :  { %v23_v9 = vld [vmem:[%s630_s1 + $0x10] sm:$0xff]  ;;  %v30_v10 = vld [vmem:[%s630_s1 + $0x48] sm:$0xff]  ;;  %v36_v11 = vld [vmem:[%s630_s1 + $0x78] sm:$0xff] }
   0x9   :  { %v24_v12 = vld [vmem:[%s630_s1 + $0x18] sm:$0xff]  ;;  %v31_v13 = vld [vmem:[%s630_s1 + $0x50] sm:$0xff]  ;;  %v25_v14 = vld [vmem:[%s630_s1 + $0x20] sm:$0xff] }
   0xa   :  { %v32_v15 = vld [vmem:[%s630_s1 + $0x58] sm:$0xff]  ;;  %v26_v16 = vld [vmem:[%s630_s1 + $0x28] sm:$0xff] }
   0xb   :  { %364 = vmatmul.msk.f32.gmra.mxu2 %vm38_vm1, %v28_v4  ;;  %370 = vmatmul.msk.f32.gmra.mxu3 %vm38_vm1, %v34_v5 }
   0xd   :  { %358 = vmatmul.msk.f32.gmra.mxu0 %vm38_vm1, %v22_v6 }
  0x13   :  { %365 = vmatmul.msk.f32.gmra.mxu2 %vm38_vm1, %v29_v7  ;;  %371 = vmatmul.msk.f32.gmra.mxu3 %vm38_vm1, %v35_v8  ;;  %v269_v8 = vld [vmem:[%s632_s3] sm:$0x3] }
  0x15   :  { %359 = vmatmul.msk.f32.gmra.mxu0 %vm38_vm1, %v23_v9 }
  0x1b   :  { %366 = vmatmul.msk.f32.gmra.mxu2 %vm38_vm1, %v30_v10  ;;  %372 = vmatmul.msk.f32.gmra.mxu3 %vm38_vm1, %v36_v11  ;;  %v460_v11 = vmov 0  }
  0x1c   :  { %394 = vset.pattern.permute.xlu0 %v460_v11 }
  0x1d   :  { %360 = vmatmul.msk.f32.gmra.mxu0 %vm38_vm1, %v24_v12  ;;  %272 = vperm.xlu0 %394, %v269_v8  }
  0x23   :  { %367 = vmatmul.msk.f32.gmra.mxu2 %vm38_vm1, %v31_v13 }
  0x25   :  { %361 = vmatmul.msk.f32.gmra.mxu0 %vm38_vm1, %v25_v14 }
  0x2b   :  { %368 = vmatmul.msk.f32.gmra.mxu2 %vm38_vm1, %v32_v15 }
  0x2d   :  { %362 = vmatmul.msk.f32.gmra.mxu0 %vm38_vm1, %v26_v16 }
  0x82   :  { %v559_v17 = vpop.f32.mrf.mxu0 }
  0x83   :  { %vm156_vm1 = vcmp.gt.f32.partialorder %v559_v17, 0.0 }
  0x86   :  { %v561_v18 = vpop.f32.mrf.mxu2  ;;  %v144_v19 = vpop.f32.mrf.mxu3 }
  0x87   :  { %v196_v29 = vmul.f32 1.442695, %v144_v19  ;;  %v184_v56 = vmul.f32 1.442695, %v561_v18  ;;  %vm168_vm5 = vcmp.gt.f32.partialorder %v144_v19, 0.0  ;;  %vm162_vm11 = vcmp.gt.f32.partialorder %v561_v18, 0.0 }
  0x8a   :  { %v563_v20 = vpop.f32.mrf.mxu0 }
  0x8b   :  { %v174_v16 = vmul.f32 1.442695, %v563_v20  ;;  %vm157_vm0 = vcmp.gt.f32.partialorder %v563_v20, 0.0 }
  0x8e   :  { %v565_v21 = vpop.f32.mrf.mxu2  ;;  %v147_v22 = vpop.f32.mrf.mxu3 }
  0x8f   :  { %v198_v27 = vmul.f32 1.442695, %v147_v22  ;;  %v186_v49 = vmul.f32 1.442695, %v565_v21  ;;  %vm169_vm4 = vcmp.gt.f32.partialorder %v147_v22, 0.0  ;;  %vm163_vm10 = vcmp.gt.f32.partialorder %v565_v21, 0.0 }
  0x92   :  { %v567_v23 = vpop.f32.mrf.mxu0 }
  0x93   :  { %v176_v10 = vmul.f32 1.442695, %v567_v23  ;;  %vm158_vm15 = vcmp.gt.f32.partialorder %v567_v23, 0.0 }
  0x96   :  { %v569_v24 = vpop.f32.mrf.mxu2  ;;  %v150_v25 = vpop.f32.mrf.mxu3 }
  0x97   :  { %v200_v26 = vmul.f32 1.442695, %v150_v25  ;;  %v188_v46 = vmul.f32 1.442695, %v569_v24  ;;  %vm170_vm2 = vcmp.gt.f32.partialorder %v150_v25, 0.0  ;;  %vm164_vm9 = vcmp.gt.f32.partialorder %v569_v24, 0.0 }
  0x99   :  { %396 = vpow2.f32 %v200_v26 }
  0x9a   :  { %v571_v28 = vpop.f32.mrf.mxu0  ;;  %398 = vpow2.f32 %v198_v27  ;;  %v172_v27 = vmul.f32 1.442695, %v559_v17 }
  0x9b   :  { %400 = vpow2.f32 %v196_v29  ;;  %v178_v5 = vmul.f32 1.442695, %v571_v28  ;;  %vm159_vm14 = vcmp.gt.f32.partialorder %v571_v28, 0.0 }
  0x9e   :  { %v573_v30 = vpop.f32.mrf.mxu2  ;;  %v153_v31 = vpop.f32.mrf.mxu3 }
  0x9f   :  { %v202_v32 = vmul.f32 1.442695, %v153_v31  ;;  %v397_v33 = vpop.eup %396  ;;  %v190_v43 = vmul.f32 1.442695, %v573_v30  ;;  %vm171_vm3 = vcmp.gt.f32.partialorder %v153_v31, 0.0  ;;  %vm165_vm8 = vcmp.gt.f32.partialorder %v573_v30, 0.0 }
  0xa0   :  { %v399_v34 = vpop.eup %398  ;;  %v387_v36 = vadd.f32 -1.0, %v397_v33 }
  0xa1   :  { %402 = vpow2.f32 %v202_v32  ;;  %v401_v37 = vpop.eup %400  ;;  %v386_v39 = vadd.f32 -1.0, %v399_v34 }
  0xa2   :  { %v575_v35 = vpop.f32.mrf.mxu0  ;;  %v385_v42 = vadd.f32 -1.0, %v401_v37  ;;  %v234_v45 = vmul.f32 1.6732632, %v387_v36 }
  0xa3   :  { %v233_v48 = vmul.f32 1.6732632, %v386_v39  ;;  %v180_v1 = vmul.f32 1.442695, %v575_v35  ;;  %vm160_vm13 = vcmp.gt.f32.partialorder %v575_v35, 0.0 }
  0xa4   :  { %v250_v51 = vsel %vm170_vm2, %v150_v25, %v234_v45  ;;  %v232_v52 = vmul.f32 1.6732632, %v385_v42 }
  0xa5   :  { %v249_v58 = vsel %vm169_vm4, %v147_v22, %v233_v48  ;;  %v266_v59 = vmul.f32 1.050701, %v250_v51  ;;  %vm337_vm4 = vcmask 1040384  }
  0xa6   :  { %v577_v38 = vpop.f32.mrf.mxu2  ;;  %v248_v62 = vsel %vm168_vm5, %v144_v19, %v232_v52  ;;  %v265_v63 = vmul.f32 1.050701, %v249_v58 }
  0xa7   :  { %v192_v40 = vmul.f32 1.442695, %v577_v38  ;;  %v403_v41 = vpop.eup %402  ;;  %v264_v3 = vmul.f32 1.050701, %v248_v62  ;;  %vm166_vm6 = vcmp.gt.f32.partialorder %v577_v38, 0.0 }
  0xa8   :  { %v388_v44 = vadd.f32 -1.0, %v403_v41 }
  0xa9   :  { %404 = vpow2.f32 %v192_v40 }
  0xaa   :  { %v235_v47 = vmul.f32 1.6732632, %v388_v44  ;;  %406 = vpow2.f32 %v190_v43  ;;  %v583_v53 = vpop.f32.mrf.mxu0 }
  0xab   :  { %408 = vpow2.f32 %v188_v46  ;;  %v182_v61 = vmul.f32 1.442695, %v583_v53  ;;  %vm161_vm12 = vcmp.gt.f32.partialorder %v583_v53, 0.0 }
  0xac   :  { %v251_v50 = vsel %vm171_vm3, %v153_v31, %v235_v47  ;;  %410 = vpow2.f32 %v186_v49 }
  0xad   :  { %v267_v55 = vmul.f32 1.050701, %v251_v50 }
  0xae   :  { %v141_v54 = vpop.f32.mrf.mxu2 }
  0xaf   :  { %v194_v57 = vmul.f32 1.442695, %v141_v54  ;;  %275 = vmatpush.msra.mxu1 %v267_v55  ;;  %v405_v60 = vpop.eup %404  ;;  %vm167_vm7 = vcmp.gt.f32.partialorder %v141_v54, 0.0 }
  0xb0   :  { %v407_v0 = vpop.eup %406  ;;  %v383_v2 = vadd.f32 -1.0, %v405_v60 }
  0xb1   :  { %412 = vpow2.f32 %v194_v57  ;;  %276 = vmatpush.msra.mxu1 %v266_v59  ;;  %v409_v4 = vpop.eup %408  ;;  %v382_v7 = vadd.f32 -1.0, %v407_v0 }
  0xb2   :  { %414 = vpow2.f32 %v184_v56  ;;  %v411_v6 = vpop.eup %410  ;;  %v381_v12 = vadd.f32 -1.0, %v409_v4  ;;  %v230_v14 = vmul.f32 1.6732632, %v383_v2 }
  0xb3   :  { %277 = vmatpush.msra.mxu1 %v265_v63  ;;  %416 = vpow2.f32 %v182_v61  ;;  %v380_v19 = vadd.f32 -1.0, %v411_v6  ;;  %v229_v25 = vmul.f32 1.6732632, %v382_v7  ;;  %v268_v6 = vld [vmem:[%s631_s2] sm:$0x3] }
  0xb4   :  { %418 = vpow2.f32 %v180_v1  ;;  %v246_v32 = vsel %vm166_vm6, %v577_v38, %v230_v14  ;;  %v228_v33 = vmul.f32 1.6732632, %v381_v12 }
  0xb5   :  { %278 = vmatpush.msra.mxu1 %v264_v3  ;;  %420 = vpow2.f32 %v178_v5  ;;  %v245_v39 = vsel %vm165_vm8, %v573_v30, %v229_v25  ;;  %v227_v40 = vmul.f32 1.6732632, %v380_v19  ;;  %v262_v42 = vmul.f32 1.050701, %v246_v32  ;;  %v314_v32 = vld [vmem:[%s633_s4] sm:$0x1] }
  0xb6   :  { %422 = vpow2.f32 %v176_v10  ;;  %v244_v44 = vsel %vm164_vm9, %v569_v24, %v228_v33  ;;  %v261_v46 = vmul.f32 1.050701, %v245_v39 }
  0xb7   :  { %v413_v9 = vpop.eup %412  ;;  %424 = vpow2.f32 %v174_v16  ;;  %v243_v30 = vsel %vm163_vm10, %v565_v21, %v227_v40  ;;  %v260_v50 = vmul.f32 1.050701, %v244_v44 }
  0xb8   :  { %v384_v13 = vadd.f32 -1.0, %v413_v9  ;;  %v415_v15 = vpop.eup %414  ;;  %426 = vpow2.f32 %v172_v27  ;;  %v259_v55 = vmul.f32 1.050701, %v243_v30 }
  0xb9   :  { %v417_v26 = vpop.eup %416  ;;  %v379_v29 = vadd.f32 -1.0, %v415_v15 }
  0xba   :  { %v231_v22 = vmul.f32 1.6732632, %v384_v13  ;;  %v419_v34 = vpop.eup %418  ;;  %v378_v37 = vadd.f32 -1.0, %v417_v26 }
  0xbb   :  { %v421_v41 = vpop.eup %420  ;;  %v377_v43 = vadd.f32 -1.0, %v419_v34  ;;  %v226_v38 = vmul.f32 1.6732632, %v379_v29  ;;  %v395_v34 = vld [vmem:[%s633_s4] ss:$0 sm:$0xff] }
  0xbc   :  { %v247_v31 = vsel %vm167_vm7, %v141_v54, %v231_v22  ;;  %v423_v45 = vpop.eup %422  ;;  %v376_v47 = vadd.f32 -1.0, %v421_v41  ;;  %v225_v48 = vmul.f32 1.6732632, %v378_v37 }
  0xbd   :  { %v263_v36 = vmul.f32 1.050701, %v247_v31  ;;  %v425_v49 = vpop.eup %424  ;;  %v375_v51 = vadd.f32 -1.0, %v423_v45  ;;  %v242_v24 = vsel %vm162_vm11, %v561_v18, %v226_v38  ;;  %v224_v52 = vmul.f32 1.6732632, %v377_v43 }
  0xbe   :  { %v427_v54 = vpop.eup %426  ;;  %v374_v56 = vadd.f32 -1.0, %v425_v49  ;;  %v241_v57 = vsel %vm161_vm12, %v583_v53, %v225_v48  ;;  %v223_v21 = vmul.f32 1.6732632, %v376_v47  ;;  %v258_v58 = vmul.f32 1.050701, %v242_v24 }
  0xbf   :  { %279 = vmatpush.msra.mxu1 %v263_v36  ;;  %v373_v59 = vadd.f32 -1.0, %v427_v54  ;;  %v240_v60 = vsel %vm160_vm13, %v575_v35, %v224_v52  ;;  %v222_v61 = vmul.f32 1.6732632, %v375_v51  ;;  %v257_v18 = vmul.f32 1.050701, %v241_v57 }
  0xc0   :  { %v239_v62 = vsel %vm159_vm14, %v571_v28, %v223_v21  ;;  %v221_v63 = vmul.f32 1.6732632, %v374_v56  ;;  %v256_v53 = vmul.f32 1.050701, %v240_v60  ;;  %v323_v36 = vmul.f32 %v314_v32, %v314_v32 }
  0xc1   :  { %280 = vmatpush.msra.mxu1 %v262_v42  ;;  %v238_v0 = vsel %vm158_vm15, %v567_v23, %v222_v61  ;;  %v220_v1 = vmul.f32 1.6732632, %v373_v59  ;;  %v255_v2 = vmul.f32 1.050701, %v239_v62  ;;  %v273_v23 = vpop.permute.xlu0 %272 }
  0xc2   :  { %v237_v35 = vsel %vm157_vm0, %v563_v20, %v221_v63  ;;  %v254_v3 = vmul.f32 1.050701, %v238_v0  ;;  %v324_v39 = vmul.f32 -0.5, %v323_v36 }
  0xc3   :  { %281 = vmatpush.msra.mxu1 %v261_v46  ;;  %v236_v4 = vsel %vm156_vm1, %v559_v17, %v220_v1  ;;  %v253_v28 = vmul.f32 1.050701, %v237_v35 }
  0xc4   :  { %v252_v5 = vmul.f32 1.050701, %v236_v4 }
  0xc5   :  { %282 = vmatpush.msra.mxu1 %v260_v50 }
  0xc7   :  { %283 = vmatpush.msra.mxu1 %v259_v55 }
  0xc9   :  { %284 = vmatpush.msra.mxu1 %v258_v58 }
  0xcb   :  { %285 = vmatpush.msra.mxu1 %v257_v18 }
  0xcd   :  { %286 = vmatpush.msra.mxu1 %v256_v53 }
  0xcf   :  { %287 = vmatpush.msra.mxu1 %v255_v2 }
  0xd1   :  { %288 = vmatpush.msra.mxu1 %v254_v3 }
  0xd3   :  { %289 = vmatpush.msra.mxu1 %v253_v28 }
  0xd5   :  { %290 = vmatpush.msra.mxu1 %v252_v5 }
  0xd6   :  { %291 = vmatmul.f32.vlgmr.msra.gmra.mxu1 %v268_v6 }
 0x153   :  { %v292_v7 = vpop.f32.mrf.mxu1 }
 0x154   :  { %v293_v8 = vadd.f32 %v292_v7, %v273_v23 }
 0x156   :  { %v296_v9 = vsub.f32 0.0, %v293_v8  ;;  %v295_v25 = vmax.f32 %v293_v8, 0.0 }
 0x158   :  { %v299_v10 = vand.u32 2147483647, %v296_v9  ;;  %vm297_vm3 = vcmp.ne.f32.partialorder %v296_v9, %v296_v9 }
 0x15a   :  { %v300_v20 = vsub.f32 0.0, %v299_v10 }
 0x15c   :  { %v301_v11 = vmul.f32 1.442695, %v300_v20 }
 0x15e   :  { %428 = vpow2.f32 %v301_v11 }
 0x164   :  { %v429_v12 = vpop.eup %428 }
 0x165   :  { %v303_v17 = vadd.f32 1.0, %v429_v12  ;;  %v306_v13 = vmul.f32 -0.5, %v429_v12  ;;  %v309_v15 = vand.u32 2147483647, %v429_v12 }
 0x167   :  { %430 = vlog2.f32 %v303_v17  ;;  %v307_v14 = vadd.f32 1.0, %v306_v13  ;;  %vm310_vm2 = vcmp.lt.f32.partialorder %v309_v15, 0.0004427343 }
 0x169   :  { %v308_v22 = vmul.f32 %v429_v12, %v307_v14 }
 0x16d   :  { %v431_v16 = vpop.eup %430 }
 0x16e   :  { %v305_v19 = vmul.f32 0.6931472, %v431_v16 }
 0x170   :  { %v311_v26 = vsel %vm310_vm2, %v308_v22, %v305_v19 }
 0x171   :  { %v312_v27 = vadd.f32 %v311_v26, %v295_v25 }
 0x173   :  { %v313_v29 = vsel %vm297_vm3, %v293_v8, %v312_v27 }
 0x174   :  { %432 = vlog2.f32 %v313_v29  ;;  %v318_v37 = vmul.f32 %v395_v34, %v313_v29 }
 0x176   :  { %v320_v41 = vrot.slane %v318_v37, 1 }
 0x178   :  { %v322_v44 = vadd.f32 %v320_v41, %v293_v8 }
 0x17a   :  { %v433_v31 = vpop.eup %432 }
 0x17b   :  { %v326_v33 = vmul.f32 0.6931472, %v433_v31 }
 0x17d   :  { %328 = vst [vmem:[#allocation1] sm:$0xff] %v326_v33 }
 0x184   :  { %v330_v40 = vld [vmem:[#allocation1 + $0x1] ss:$9 sm:$0xff] }
 0x185   :  { %v332_v42 = vsub.f32 %v324_v39, %v330_v40 }
 0x187   :  { %v389_v43 = vadd.f32 -0.9189385, %v332_v42 }
 0x189   :  { %v335_v38 = vperm.slane %v389_v43, 0 }
 0x18b   :  { %v338_v45 = vsel %vm337_vm4, %v322_v44, %v335_v38 }
 0x18c   :  { %339 = vst [vmem:[#allocation2] sm:$0x3] %v338_v45 }
 0x18d   :  { %350 = dma.vmem_to_hbm [thread:$0]  %s346_s6, 32, %s348_s9, [#allocation3]  }
 0x18e   :  { %458 = dma.done.wait [#allocation3], 32  }
 0x18f   :  { %459 = vsyncadd [#allocation3], 4294967264 }
 0x190   :  { %355 = vsyncpa [#allocation3], 1 }

</bundles_post_ra>
